<compile_context>
chip_gen: v6e
topology: v6e:2x2x1
jax: 0.10.0
libtpu: 0.0.40
codegen_flags: <defaults>
</compile_context>

<pallas_src>
import functools
import math

import jax
import jax.numpy as jnp
from jax.experimental import pallas as pl
from jax.experimental.pallas import tpu as pltpu


# ------------------------------- helpers ----------------------------------- #

def _round_up(x, m):
    return ((x + m - 1) // m) * m


def _vmem_capacity_bytes():
    try:
        return int(pltpu.get_tpu_info().vmem_capacity_bytes)
    except Exception:
        return 64 << 20  # conservative fallback: v7x per-TensorCore VMEM


def _vmem_bytes_estimate(tm, th, dp):
    # Double-buffered pipelined blocks + accumulator + in-kernel temporaries.
    return (2 * tm * dp * 4          # x tiles (f32, double-buffered)
            + 2 * tm * dp * 4        # out tiles (f32, double-buffered)
            + 2 * dp * th * 2        # w1t blocks (bf16, double-buffered)
            + 2 * th * dp * 2        # w2t blocks (bf16, double-buffered)
            + 2 * 8 * th * 4         # b1 blocks (sublane-padded f32)
            + 2 * 8 * dp * 4         # b2 blocks
            + tm * dp * 4            # f32 accumulator scratch
            + tm * th * 6            # hidden activation (f32 + bf16 copies)
            + tm * dp * 2)           # bf16 copy of x tile


def _choose_tiles(n_rows, dp, hp, budget):
    # Hidden-dim tiles: 128-multiples that divide the padded hidden dim, so no
    # partial reduction blocks ever appear.
    m = hp // 128
    th_cands = [128 * d for d in range(m, 0, -1) if m % d == 0]
    if n_rows > 512:
        tm_cands = [512, 256, 128, 64, 32, 16, 8]
    else:
        # >= 2 row blocks so both v7x TensorCores get work and DMA overlaps compute.
        tm0 = max(8, _round_up(-(-n_rows // 2), 8))
        tm_cands = [tm0] + [t for t in (256, 128, 64, 32, 16, 8) if t < tm0]
    for tm in tm_cands:
        for th in th_cands:
            if _vmem_bytes_estimate(tm, th, dp) <= budget:
                return tm, th
    return tm_cands[-1], th_cands[-1]


# ----------------------------- Pallas kernel ------------------------------- #

def _ffn_kernel(x_ref, w1t_ref, b1_ref, w2t_ref, b2_ref, o_ref, acc_ref):
    # Grid: (row tiles ["parallel"], hidden tiles ["arbitrary" / reduction]).
    # x_ref  : (TM, Dp) f32   row tile of the flattened, feature-padded input
    # w1t_ref: (Dp, TH) bf16  column block of W1^T
    # b1_ref : (1, TH)  f32
    # w2t_ref: (TH, Dp) bf16  row block of W2^T
    # b2_ref : (1, Dp)  f32
    # o_ref  : (TM, Dp) f32
    # acc_ref: (TM, Dp) f32   VMEM accumulator for the second matmul
    k = pl.program_id(1)

    @pl.when(k == 0)
    def _():
        acc_ref[...] = jnp.zeros_like(acc_ref)

    x = x_ref[...].astype(jnp.bfloat16)                        # bf16 MXU inputs
    h = jnp.dot(x, w1t_ref[...], preferred_element_type=jnp.float32)
    h = jnp.maximum(h + b1_ref[...], 0.0)                      # relu(ff_1(x)), f32
    # TODO(synk): training-mode dropout (p > 0) would go here via
    # pltpu.prng_seed / pltpu.stateful_bernoulli; p=0.0 / eval => identity.
    acc_ref[...] += jnp.dot(h.astype(jnp.bfloat16), w2t_ref[...],
                            preferred_element_type=jnp.float32)

    @pl.when(k == pl.num_programs(1) - 1)
    def _():
        o_ref[...] = jnp.maximum(acc_ref[...] + b2_ref[...], 0.0
                                 ).astype(o_ref.dtype)         # relu(ff_2(h))


# ------------------------------ forward (jitted) --------------------------- #

def _ffn_forward(X, w1t, b1, w2t, b2, *, vmem_cap):
    D = X.shape[-1]
    Dp, Hp = w1t.shape
    orig_shape = X.shape

    # Layout plumbing: flatten leading dims into rows, pad features to Dp.
    x2d = X.reshape(-1, D).astype(jnp.float32)
    N = x2d.shape[0]
    if Dp != D:
        x2d = jnp.pad(x2d, ((0, 0), (0, Dp - D)))

    budget = max(int(vmem_cap * 0.70), 8 << 20)
    vmem_limit = max(int(vmem_cap * 0.85), 16 << 20)
    TM, TH = _choose_tiles(N, Dp, Hp, budget)
    grid = (pl.cdiv(N, TM), Hp // TH)

    cost = pl.CostEstimate(
        flops=4 * N * Dp * Hp,                      # two matmuls
        transcendentals=0,
        bytes_accessed=(2 * N * Dp * 4              # read X, write Z (f32)
                        + 2 * Dp * Hp * 2           # bf16 weights
                        + (Hp + Dp) * 4))           # biases

    out2d = pl.pallas_call(
        _ffn_kernel,
        out_shape=jax.ShapeDtypeStruct((N, Dp), jnp.float32),
        grid_spec=pltpu.PrefetchScalarGridSpec(
            num_scalar_prefetch=0,
            grid=grid,
            in_specs=[
                pl.BlockSpec((TM, Dp), lambda i, k: (i, 0)),   # x rows
                pl.BlockSpec((Dp, TH), lambda i, k: (0, k)),   # W1^T cols
                pl.BlockSpec((1, TH), lambda i, k: (0, k)),    # b1 slice
                pl.BlockSpec((TH, Dp), lambda i, k: (k, 0)),   # W2^T rows
                pl.BlockSpec((1, Dp), lambda i, k: (0, 0)),    # b2
            ],
            out_specs=pl.BlockSpec((TM, Dp), lambda i, k: (i, 0)),
            scratch_shapes=[pltpu.VMEM((TM, Dp), jnp.float32)],
        ),
        compiler_params=pltpu.CompilerParams(
            dimension_semantics=("parallel", "arbitrary"),
            vmem_limit_bytes=vmem_limit),
        cost_estimate=cost,
    )(x2d, w1t, b1, w2t, b2)

    if Dp != D:
        out2d = out2d[:, :D]
    return out2d.reshape(orig_shape).astype(X.dtype)


# ------------------------------ Module wrapper ----------------------------- #

class FeedForward:
    """JAX/Pallas port of setmtr.modules.FeedForward (forward / eval)."""

    def __init__(self, model_dim, dropout=0.0, *, key):
        self.model_dim = model_dim
        self.hidden_dim = 4 * model_dim
        self.dropout = dropout  # unused at inference (identity)

        k1w, k1b, k2w, k2b = jax.random.split(key, 4)
        # nn.Linear init: U(-1/sqrt(fan_in), 1/sqrt(fan_in)) for W and b.
        bound1 = 1.0 / math.sqrt(model_dim)
        self.w1 = jax.random.uniform(k1w, (self.hidden_dim, model_dim),
                                     minval=-bound1, maxval=bound1,
                                     dtype=jnp.float32)
        self.b1 = jax.random.uniform(k1b, (self.hidden_dim,),
                                     minval=-bound1, maxval=bound1,
                                     dtype=jnp.float32)
        bound2 = 1.0 / math.sqrt(self.hidden_dim)
        self.w2 = jax.random.uniform(k2w, (model_dim, self.hidden_dim),
                                     minval=-bound2, maxval=bound2,
                                     dtype=jnp.float32)
        self.b2 = jax.random.uniform(k2b, (model_dim,),
                                     minval=-bound2, maxval=bound2,
                                     dtype=jnp.float32)

        # One-time kernel-side parameter prep: pad to 128-multiples (lane-dense,
        # zero padding is numerically inert through relu), pre-transpose, and
        # pre-cast the matmul operands to bf16.  Biases stay f32 (f32 epilogue).
        D, H = model_dim, self.hidden_dim
        Dp, Hp = _round_up(D, 128), _round_up(H, 128)
        self.w1t = jnp.zeros((Dp, Hp), jnp.bfloat16
                             ).at[:D, :H].set(self.w1.T.astype(jnp.bfloat16))
        self.b1p = jnp.zeros((1, Hp), jnp.float32).at[0, :H].set(self.b1)
        self.w2t = jnp.zeros((Hp, Dp), jnp.bfloat16
                             ).at[:H, :D].set(self.w2.T.astype(jnp.bfloat16))
        self.b2p = jnp.zeros((1, Dp), jnp.float32).at[0, :D].set(self.b2)

        self._vmem_cap = _vmem_capacity_bytes()
        self._fwd = jax.jit(functools.partial(_ffn_forward,
                                              vmem_cap=self._vmem_cap))

    def __call__(self, X):
        return self._fwd(X, self.w1t, self.b1p, self.w2t, self.b2p)


# --------------------------------- Demo ------------------------------------ #

if __name__ == "__main__":
    key = jax.random.PRNGKey(0)
    k_mod, k_x = jax.random.split(key)

    model_dim = 32
    batch = 2
    seq = 8

    ff = FeedForward(model_dim, dropout=0.0, key=k_mod)
    X = jax.random.normal(k_x, (batch, seq, model_dim), dtype=jnp.float32)

    Z = jax.block_until_ready(ff(X))

    # Pure-JAX f32 reference.  The kernel uses bf16 MXU inputs with f32
    # accumulation, so compare with a tolerance that covers bf16 input rounding.
    ref = jnp.maximum(X @ ff.w1.T + ff.b1, 0.0)
    ref = jnp.maximum(ref @ ff.w2.T + ff.b2, 0.0)

    ok = (Z.shape == (batch, seq, model_dim)) and bool(
        jnp.allclose(Z, ref, atol=3e-2, rtol=3e-2))

    print("KERNEL_OK" if ok else "KERNEL_MISMATCH")
</pallas_src>

<mosaic_0001>
module attributes {stable_mosaic.version = 11 : i64} {
  func.func @_ffn_kernel(%arg0: i32, %arg1: i32, %arg2: memref<8x128xf32, #tpu.memory_space<vmem>>, %arg3: memref<128x128xbf16, #tpu.memory_space<vmem>>, %arg4: memref<1x128xf32, #tpu.memory_space<vmem>>, %arg5: memref<128x128xbf16, #tpu.memory_space<vmem>>, %arg6: memref<1x128xf32, #tpu.memory_space<vmem>>, %arg7: memref<8x128xf32, #tpu.memory_space<vmem>>, %arg8: memref<8x128xf32, #tpu.memory_space<vmem>>) attributes {dimension_semantics = [#tpu.dimension_semantics<parallel>, #tpu.dimension_semantics<arbitrary>], iteration_bounds = array<i64: 2, 1>, scalar_prefetch = 0 : i64, scratch_operands = 1 : i64, tpu.core_type = #tpu.core_type<tc>, window_params = [{transform_indices = @transform_0, window_bounds = array<i64: 8, 128>}, {transform_indices = @transform_1, window_bounds = array<i64: 128, 128>}, {transform_indices = @transform_2, window_bounds = array<i64: 1, 128>}, {transform_indices = @transform_3, window_bounds = array<i64: 128, 128>}, {pipeline_mode = #tpu.pipeline_mode<synchronous>, transform_indices = @transform_4, window_bounds = array<i64: 1, 128>}, {transform_indices = @transform_5, window_bounds = array<i64: 8, 128>}]} {
    %c0_i32 = arith.constant 0 : i32
    %0 = arith.cmpi eq, %arg1, %c0_i32 : i32
    %1 = arith.extui %0 : i1 to i32
    %c0_i32_0 = arith.constant 0 : i32
    %2 = arith.cmpi ne, %1, %c0_i32_0 : i32
    scf.if %2 {
      %cst_16 = arith.constant 0.000000e+00 : f32
      %21 = vector.broadcast %cst_16 : f32 to vector<8x128xf32>
      %c0_17 = arith.constant 0 : index
      %c0_18 = arith.constant 0 : index
      %22 = vector.load %arg8[%c0_17, %c0_18] : memref<8x128xf32, #tpu.memory_space<vmem>>, vector<8x128xf32>
      tpu.vector_store %arg8[%c0_17, %c0_18], %21 {strides = array<i32>} : memref<8x128xf32, #tpu.memory_space<vmem>>, vector<8x128xf32>,
    } else {
    }
    %c0 = arith.constant 0 : index
    %c0_1 = arith.constant 0 : index
    %3 = vector.load %arg2[%c0, %c0_1] : memref<8x128xf32, #tpu.memory_space<vmem>>, vector<8x128xf32>
    %4 = arith.truncf %3 : vector<8x128xf32> to vector<8x128xbf16>
    %c0_2 = arith.constant 0 : index
    %c0_3 = arith.constant 0 : index
    %5 = vector.load %arg3[%c0_2, %c0_3] : memref<128x128xbf16, #tpu.memory_space<vmem>>, vector<128x128xbf16>
    %cst = arith.constant dense<0.000000e+00> : vector<8x128xf32>
    %6 = tpu.matmul %4, %5, %cst {dimension_numbers = #tpu.dot_dimension_numbers<[1], [0], [0], [1], [0, 0, 1, 1], [], []>} : vector<8x128xbf16>, vector<128x128xbf16>, vector<8x128xf32> -> vector<8x128xf32>
    %c0_4 = arith.constant 0 : index
    %c0_5 = arith.constant 0 : index
    %7 = vector.load %arg4[%c0_4, %c0_5] : memref<1x128xf32, #tpu.memory_space<vmem>>, vector<1x128xf32>
    %8 = vector.broadcast %7 : vector<1x128xf32> to vector<8x128xf32>
    %9 = arith.addf %6, %8 : vector<8x128xf32>
    %cst_6 = arith.constant 0.000000e+00 : f32
    %10 = vector.broadcast %cst_6 : f32 to vector<8x128xf32>
    %11 = arith.maximumf %9, %10 : vector<8x128xf32>
    %c0_7 = arith.constant 0 : index
    %c0_8 = arith.constant 0 : index
    %12 = vector.load %arg8[%c0_7, %c0_8] : memref<8x128xf32, #tpu.memory_space<vmem>>, vector<8x128xf32>
    %13 = arith.truncf %11 : vector<8x128xf32> to vector<8x128xbf16>
    %c0_9 = arith.constant 0 : index
    %c0_10 = arith.constant 0 : index
    %14 = vector.load %arg5[%c0_9, %c0_10] : memref<128x128xbf16, #tpu.memory_space<vmem>>, vector<128x128xbf16>
    %cst_11 = arith.constant dense<0.000000e+00> : vector<8x128xf32>
    %15 = tpu.matmul %13, %14, %cst_11 {dimension_numbers = #tpu.dot_dimension_numbers<[1], [0], [0], [1], [0, 0, 1, 1], [], []>} : vector<8x128xbf16>, vector<128x128xbf16>, vector<8x128xf32> -> vector<8x128xf32>
    %16 = arith.addf %12, %15 : vector<8x128xf32>
    %c0_12 = arith.constant 0 : index
    %c0_13 = arith.constant 0 : index
    %17 = vector.load %arg8[%c0_12, %c0_13] : memref<8x128xf32, #tpu.memory_space<vmem>>, vector<8x128xf32>
    tpu.vector_store %arg8[%c0_12, %c0_13], %16 {strides = array<i32>} : memref<8x128xf32, #tpu.memory_space<vmem>>, vector<8x128xf32>,
    %c0_i32_14 = arith.constant 0 : i32
    %18 = arith.cmpi eq, %arg1, %c0_i32_14 : i32
    %19 = arith.extui %18 : i1 to i32
    %c0_i32_15 = arith.constant 0 : i32
    %20 = arith.cmpi ne, %19, %c0_i32_15 : i32
    scf.if %20 {
      %c0_16 = arith.constant 0 : index
      %c0_17 = arith.constant 0 : index
      %21 = vector.load %arg8[%c0_16, %c0_17] : memref<8x128xf32, #tpu.memory_space<vmem>>, vector<8x128xf32>
      %c0_18 = arith.constant 0 : index
      %c0_19 = arith.constant 0 : index
      %22 = vector.load %arg6[%c0_18, %c0_19] : memref<1x128xf32, #tpu.memory_space<vmem>>, vector<1x128xf32>
      %23 = vector.broadcast %22 : vector<1x128xf32> to vector<8x128xf32>
      %24 = arith.addf %21, %23 : vector<8x128xf32>
      %cst_20 = arith.constant 0.000000e+00 : f32
      %25 = vector.broadcast %cst_20 : f32 to vector<8x128xf32>
      %26 = arith.maximumf %24, %25 : vector<8x128xf32>
      %c0_21 = arith.constant 0 : index
      %c0_22 = arith.constant 0 : index
      %27 = vector.load %arg7[%c0_21, %c0_22] : memref<8x128xf32, #tpu.memory_space<vmem>>, vector<8x128xf32>
      tpu.vector_store %arg7[%c0_21, %c0_22], %26 {strides = array<i32>} : memref<8x128xf32, #tpu.memory_space<vmem>>, vector<8x128xf32>,
    } else {
    }
    return
  }
  func.func @transform_0(%arg0: i32, %arg1: i32) -> (i32, i32) {
    %c0_i32 = arith.constant 0 : i32
    %c0_i32_0 = arith.constant 0 : i32
    return %arg0, %c0_i32 : i32, i32
  }
  func.func @transform_1(%arg0: i32, %arg1: i32) -> (i32, i32) {
    %c0_i32 = arith.constant 0 : i32
    %c0_i32_0 = arith.constant 0 : i32
    return %c0_i32, %arg1 : i32, i32
  }
  func.func @transform_2(%arg0: i32, %arg1: i32) -> (i32, i32) {
    %c0_i32 = arith.constant 0 : i32
    %c0_i32_0 = arith.constant 0 : i32
    return %c0_i32, %arg1 : i32, i32
  }
  func.func @transform_3(%arg0: i32, %arg1: i32) -> (i32, i32) {
    %c0_i32 = arith.constant 0 : i32
    %c0_i32_0 = arith.constant 0 : i32
    return %arg1, %c0_i32 : i32, i32
  }
  func.func @transform_4(%arg0: i32, %arg1: i32) -> (i32, i32) {
    %c0_i32 = arith.constant 0 : i32
    %c0_i32_0 = arith.constant 0 : i32
    %c0_i32_1 = arith.constant 0 : i32
    return %c0_i32, %c0_i32_0 : i32, i32
  }
  func.func @transform_5(%arg0: i32, %arg1: i32) -> (i32, i32) {
    %c0_i32 = arith.constant 0 : i32
    %c0_i32_0 = arith.constant 0 : i32
    return %arg0, %c0_i32 : i32, i32
  }
}

</mosaic_0001>

<bundles_post_ra>
// kernel: _ffn_forward.1
= control target key start
LH: loop header
LB: loop body
LE: loop exit
PB: predicated region body
PF: predicated region fallthrough
CT: control target
= control target key end

     0   :  { %10 = vsyncpa [#allocation4], 0  ;;  %s1004_s0 = inlined_call_operand.vmem [shape: f32[16,128], index: 0, kind: input, shape index: {}]   ;;  %s1005_s1 = inlined_call_operand.hbm [shape: bf16[128,128], index: 1, kind: input, shape index: {}]   ;;  %s1006_s2 = inlined_call_operand.vmem [shape: f32[1,128], index: 2, kind: input, shape index: {}]   ;;  %s1007_s3 = inlined_call_operand.hbm [shape: bf16[128,128], index: 3, kind: input, shape index: {}]   ;;  %s1008_s4 = inlined_call_operand.vmem [shape: f32[1,128], index: 4, kind: input, shape index: {}]   ;;  %s1009_s5 = inlined_call_operand.vmem [shape: f32[16,128], index: 5, kind: output, shape index: {}]  }
   0x1   :  { %11 = vsyncpa [#allocation6], 0  ;;  %s909_s18 = smov 0   ;;  %s911_s19 = smov 0  }
   0x2   :  { %s913_s20 = smov 0  }
   0x3 LB: > { %s634_s21 = sadd.s32 4294967295, %s871_s20   ;;  %s29_s22 = sadd.s32 1, %s867_s19  ;;  %s871_s20 = sphi %s913_s20, %s17_s20   ;;  %s867_s19 = sphi %s911_s19, %s1014_s19   ;;  %s863_s18 = sphi %s909_s18, %s1013_s18  }
   0x4   : > { %p31_p0 = scmp.ge.s32.totalorder %s29_s22, 2  ;;  %p636_p1 = scmp.ge.s32.totalorder %s871_s20, 1 }
   0x5   : > { %p185_p2 = scmp.lt.s32.totalorder %s871_s20, 3  ;;  %p934_p4 = scmp.eq.s32.totalorder %s634_s21, 0 }
   0x6   : > { %s1016_s22 = smov (%p31_p0, %s29_s22), 0  ;;  %s873_s25 = smov [#allocation3]  }
   0x7   : > { %p930_p3 = pnand %p636_p1, %p185_p2  ;;  %s199_s26 = sshll.u32 %s873_s25, 4  ;;  %s200_s26 = int_to_ptr.vmem [resolvable:$true] %s199_s26 }
   0x8   : > { %s874_s28 = smov [#allocation5]   ;;  %s800_s30 = scalar_lea.vmem %s200_s26, 1024 }
   0x9   : > { %p732_p5 = pneg %p930_p3  ;;  %s221_s29 = sshll.u32 %s874_s28, 4  ;;  %s222_s29 = int_to_ptr.vmem [resolvable:$true] %s221_s29 }
   0xa   : > { %p801_p8 = scmp.ne.s32.totalorder %s200_s26, %s800_s30  ;;  %p808_p11 = scmp.lt.s32.totalorder %s200_s26, %s200_s26 }
   0xb   : > { %p942_p6 = pnand %p934_p4, %p732_p5  ;;  %p809_p12 = scmp.lt.s32.totalorder %s800_s30, %s800_s30 }
   0xd   : > { %p791_p7 = pneg %p942_p6  ;;  %p810_p13 = por %p809_p12, %p808_p11 }
   0xf   : > { %p803_p9 = pnand %p801_p8, %p791_p7 }
  0x11   : > { %p804_p10 = pneg %p803_p9 }
  0x13   : > { %p811_p0 = pnand %p810_p13, %p804_p10 }
  0x15   : > { %814 = shalt.err (!%p811_p0)
}
  0x16   : > { %s875_s6 = smov 64   ;;  %s876_s7 = smov 4  }
  0x17   : > { %735 = dma.hbm_to_vmem [thread:$0]  (!%p942_p6), %s1005_s1, 1024, %s200_s26, [#allocation4], %s875_s6, %s875_s6, %s876_s7  }
  0x18   : > { %s826_s10 = scalar_lea.vmem %s222_s29, 1024  ;;  %p834_p8 = scmp.lt.s32.totalorder %s222_s29, %s222_s29 }
  0x19   : > { %p827_p1 = scmp.ne.s32.totalorder %s222_s29, %s826_s10  ;;  %p835_p9 = scmp.lt.s32.totalorder %s826_s10, %s826_s10 }
  0x1b   : > { %p829_p2 = pnand %p827_p1, %p791_p7  ;;  %p836_p11 = por %p835_p9, %p834_p8 }
  0x1d   : > { %p830_p5 = pneg %p829_p2 }
  0x1f   : > { %p837_p10 = pnand %p836_p11, %p830_p5 }
  0x21   : > { %840 = shalt.err (!%p837_p10)
}
  0x22   : > { %738 = dma.hbm_to_vmem [thread:$0]  (!%p942_p6), %s1007_s3, 1024, %s222_s29, [#allocation6], %s875_s6, %s875_s6, %s876_s7  }
  0x23   : > { %247 = sbr.rel (%p930_p3) target bundleno = 475 (0x1db), region = 40 }
  0x28   : > { %854 = dma.done.wait (%p934_p4), [#allocation4], 1024  }
  0x29   : > { %856 = vsyncadd (%p934_p4), [#allocation4], 4294966272 }
  0x2a   : > { %858 = dma.done.wait (%p934_p4), [#allocation6], 1024  }
  0x2b   : > { %860 = vsyncadd (%p934_p4), [#allocation6], 4294966272  ;;  %v877_v0 = vmov 0.0   ;;  %vm878_vm0 = vmmov 0   ;;  %v773_v1 = vld [vmem:[#allocation3 + $0x38] sm:$0xff]   ;;  %v774_v2 = vld [vmem:[#allocation3 + $0x30] sm:$0xff]  }
  0x2c   : > { %684 = vmatprep.subr.bf16.mxu0 %v877_v0  ;;  %700 = vmatprep.mubr.msk.bf16.mxu0 %vm878_vm0, %v877_v0  ;;  %v775_v3 = vld [vmem:[#allocation3 + $0x28] sm:$0xff]   ;;  %v781_v4 = vld [vmem:[#allocation5 + $0x38] sm:$0xff]   ;;  %v776_v5 = vld [vmem:[#allocation3 + $0x20] sm:$0xff]   ;;  %p280_p3 = scmp.lt.s32.totalorder %s863_s18, 1 }
  0x2d   : > { %704 = vmatprep.subr.bf16.mxu1 %v877_v0  ;;  %720 = vmatprep.mubr.msk.bf16.mxu1 %vm878_vm0, %v877_v0  ;;  %v782_v6 = vld [vmem:[#allocation5 + $0x30] sm:$0xff]   ;;  %v777_v7 = vld [vmem:[#allocation3 + $0x18] sm:$0xff]   ;;  %v783_v8 = vld [vmem:[#allocation5 + $0x28] sm:$0xff]  }
  0x2e   : > { %685 = vmatpush3.bf16.msra.mxu0 %v773_v1  ;;  %705 = vmatpush3.bf16.msra.mxu1 %v781_v4  ;;  %s1018_s18 = smov (!%p280_p3, %s863_s18), 1  ;;  %v778_v9 = vld [vmem:[#allocation3 + $0x10] sm:$0xff]   ;;  %v784_v10 = vld [vmem:[#allocation5 + $0x20] sm:$0xff]   ;;  %v779_v11 = vld [vmem:[#allocation3 + $0x8] sm:$0xff]  }
  0x2f   : > { %686 = vmatprep.subr.bf16.mxu0 %v877_v0  ;;  %706 = vmatprep.subr.bf16.mxu1 %v877_v0  ;;  %s644_s13 = sshll.u32 %s1018_s18, 3  ;;  %v785_v12 = vld [vmem:[#allocation5 + $0x18] sm:$0xff]   ;;  %v780_v13 = vld [vmem:[#allocation3] sm:$0xff]   ;;  %v786_v15 = vld [vmem:[#allocation5 + $0x10] sm:$0xff]  }
  0x30   : > { %s283_s16 = scalar_lea.vmem %s1004_s0, %s644_s13  ;;  %v787_v17 = vld [vmem:[#allocation5 + $0x8] sm:$0xff]   ;;  %v788_v18 = vld [vmem:[#allocation5] sm:$0xff]   ;;  %s291_s27 = scalar_lea.vmem %s1009_s5, %s644_s13 }
  0x31   : > { %v298_v14 = vld [vmem:[%s283_s16] sm:$0xff] }
  0x32   : > { %687 = vmatpush3.bf16.msra.mxu0 %v774_v2  ;;  %707 = vmatpush3.bf16.msra.mxu1 %v782_v6  ;;  %v299_v16 = vpack.c.bf16 %v298_v14, %v298_v14  ;;  %v646_v19 = vld [vmem:[%s1006_s2] ss:$0 sm:$0xff] }
  0x33   : > { %688 = vmatprep.subr.bf16.mxu0 %v877_v0  ;;  %708 = vmatprep.subr.bf16.mxu1 %v877_v0  ;;  %v663_v27 = vld [vmem:[%s1008_s4] ss:$0 sm:$0xff] }
  0x36   : > { %689 = vmatpush3.bf16.msra.mxu0 %v775_v3  ;;  %709 = vmatpush3.bf16.msra.mxu1 %v783_v8 }
  0x37   : > { %690 = vmatprep.subr.bf16.mxu0 %v877_v0  ;;  %710 = vmatprep.subr.bf16.mxu1 %v877_v0 }
  0x3a   : > { %691 = vmatpush3.bf16.msra.mxu0 %v776_v5  ;;  %711 = vmatpush3.bf16.msra.mxu1 %v784_v10 }
  0x3b   : > { %692 = vmatprep.subr.bf16.mxu0 %v877_v0  ;;  %712 = vmatprep.subr.bf16.mxu1 %v877_v0 }
  0x3e   : > { %693 = vmatpush3.bf16.msra.mxu0 %v777_v7  ;;  %713 = vmatpush3.bf16.msra.mxu1 %v785_v12 }
  0x3f   : > { %694 = vmatprep.subr.bf16.mxu0 %v877_v0  ;;  %714 = vmatprep.subr.bf16.mxu1 %v877_v0 }
  0x42   : > { %695 = vmatpush3.bf16.msra.mxu0 %v778_v9  ;;  %715 = vmatpush3.bf16.msra.mxu1 %v786_v15 }
  0x43   : > { %696 = vmatprep.subr.bf16.mxu0 %v877_v0  ;;  %716 = vmatprep.subr.bf16.mxu1 %v877_v0 }
  0x46   : > { %697 = vmatpush3.bf16.msra.mxu0 %v779_v11  ;;  %717 = vmatpush3.bf16.msra.mxu1 %v787_v17 }
  0x47   : > { %698 = vmatprep.subr.bf16.mxu0 %v877_v0  ;;  %718 = vmatprep.subr.bf16.mxu1 %v877_v0 }
  0x4a   : > { %699 = vmatpush3.bf16.msra.mxu0 %v780_v13  ;;  %719 = vmatpush3.bf16.msra.mxu1 %v788_v18 }
  0x4d   : > { %701 = vmatmul.mubr.bf16.vlgmr.msra.gmra.mxu0 %v299_v16 }
 0x10d   : > { %v405_v20 = vpop.f32.mrf.mxu0 }
 0x10e   : > { %v406_v21 = vadd.f32 %v646_v19, %v405_v20 }
 0x10f   : > { %v702_v22 = vpop.f32.mrf.mxu0 }
 0x110   : > { %v411_v23 = vmax.f32 %v406_v21, 0.0 }
 0x111   : > { %v408_v24 = vpop.f32.mrf.mxu0 }
 0x112   : > { %v413_v25 = vpack.c.bf16 %v411_v23, %v411_v23 }
 0x113   : > { %v703_v26 = vpop.f32.mrf.mxu0 }
 0x114   : > { %721 = vmatmul.mubr.bf16.vlgmr.msra.gmra.mxu1 %v413_v25 }
 0x1d4   : > { %v512_v28 = vpop.f32.mrf.mxu1 }
 0x1d5   : > { %v531_v29 = vadd.f32 %v663_v27, %v512_v28 }
 0x1d6   : > { %v722_v30 = vpop.f32.mrf.mxu1 }
 0x1d7   : > { %v532_v31 = vmax.f32 %v531_v29, 0.0 }
 0x1d8   : > { %v515_v32 = vpop.f32.mrf.mxu1 }
 0x1d9   : > { %533 = vst [vmem:[%s291_s27] sm:$0xff] %v532_v31 }
 0x1da   : > { %v723_v33 = vpop.f32.mrf.mxu1 }
 0x1db PF: > { %s17_s20 = sadd.s32 1, %s871_s20   ;;  %s1013_s18 = smov %s867_s19 }
 0x1dc   : > { %p14_p4 = scmp.ge.s32.totalorder %s17_s20, 4   ;;  %s1014_s19 = smov %s1016_s22 }
 0x1de   :  { %16 = sbr.rel (!%p14_p4) target bundleno = 3 (0x3), region = 92 }
 0x1e3   :  { %553 = vsyncpa [#allocation4], 1 }
 0x1e4   :  { %555 = vsyncpa [#allocation4 + $0x1], 1 }
 0x1e5   :  { %556 = vsyncpa [#allocation6], 1 }

</bundles_post_ra>
